<compile_context>
chip_gen: v7x
topology: tpu7x:2x2x1
jax: 0.10.0
libtpu: 0.0.40
codegen_flags: <defaults>
</compile_context>

<pallas_src>
import math
from functools import partial

import jax
import jax.numpy as jnp
from jax.experimental import pallas as pl
from jax.experimental.pallas import tpu as pltpu

# ----------------------------------------------------------------------------
# Tunables / hardware-derived limits
# ----------------------------------------------------------------------------

TM = 256  # row tile for the generic matmul (time-emb linears, stride-2 fallback)


def _derive_vmem_limit():
    cap = 128 * 1024 * 1024
    try:
        cap = int(getattr(pltpu.get_tpu_info(), "vmem_capacity_bytes", cap))
    except Exception:
        pass
    # Leave >=16 MiB headroom for compiler scratch / double buffering.  Matters
    # on v7x where physical VMEM per TensorCore is only 64 MiB.
    return max(32 * 1024 * 1024, min(cap - 16 * 1024 * 1024, 100 * 1024 * 1024))


VMEM_LIMIT = _derive_vmem_limit()


def _cparams(n_parallel):
    return pltpu.CompilerParams(
        dimension_semantics=("parallel",) * n_parallel,
        vmem_limit_bytes=VMEM_LIMIT)


# ----------------------------------------------------------------------------
# Fused per-sample convolution kernel (1x1 and 3x3 'same', stride 1)
#   pre-path : optional per-channel GroupNorm apply (scale/shift) + SiLU
#   epilogue : bias + optional time-emb broadcast add + optional residual + SiLU
# ----------------------------------------------------------------------------


def _conv_kernel(*refs, ksize, Ho, Wo, pre_norm, pre_silu, post_silu,
                 has_vec, has_res):
    i = 0
    x_ref = refs[i]; i += 1
    if pre_norm:
        scale_ref = refs[i]; shift_ref = refs[i + 1]; i += 2
    w_ref = refs[i]; b_ref = refs[i + 1]; i += 2
    if has_vec:
        vec_ref = refs[i]; i += 1
    if has_res:
        res_ref = refs[i]; i += 1
    o_ref = refs[i]

    # (HW, Cin) for 1x1, (Hp, Wp, Cin) padded slab for 3x3.
    x = x_ref[0].astype(jnp.float32)
    if pre_norm:
        x = x * scale_ref[0] + shift_ref[0]          # fused GroupNorm apply
    if pre_silu:
        x = x * jax.nn.sigmoid(x)
    if pre_norm and ksize > 1:
        # The GN shift leaks a nonzero value into the zero-padded 1-px border;
        # re-zero it so the conv sees true zero padding.
        d0, d1 = x.shape[0], x.shape[1]
        row = jax.lax.broadcasted_iota(jnp.int32, (d0, d1), 0)
        col = jax.lax.broadcasted_iota(jnp.int32, (d0, d1), 1)
        interior = (row >= 1) & (row < d0 - 1) & (col >= 1) & (col < d1 - 1)
        x = x * interior.astype(x.dtype)[:, :, None]
    xb = x.astype(jnp.bfloat16)

    if ksize == 1:
        acc = jnp.dot(xb, w_ref[0], preferred_element_type=jnp.float32)
    else:
        acc = None
        # 9 shifted-window dots accumulated in VMEM: no im2col tensor in HBM.
        for dy in range(ksize):
            for dx in range(ksize):
                win = xb[dy:dy + Ho, dx:dx + Wo, :]
                t = jnp.dot(win.reshape(Ho * Wo, win.shape[-1]),
                            w_ref[dy * ksize + dx],
                            preferred_element_type=jnp.float32)
                acc = t if acc is None else acc + t

    r = acc + b_ref[...]
    if has_vec:
        r = r + vec_ref[0]                           # time-embedding broadcast
    if has_res:
        r = r + res_ref[0].astype(jnp.float32)       # fused residual add
    if post_silu:
        r = r * jax.nn.sigmoid(r)
    o_ref[0] = r.astype(o_ref.dtype)


def conv2d(x, p, *, pre=None, pre_silu=False, post_silu=False,
           add_vec=None, res=None, out_dtype=jnp.bfloat16):
    """Fused conv (1x1 or 3x3 'same', stride 1), gridded per batch sample.

    x       : (N, H, W, Cin) NHWC bf16
    p       : {'w': (k*k, Cin, Cout) bf16, 'b': (1, Cout) f32}
    pre     : optional (scale, shift), each (N, 1, Cin) f32 (fused GN apply)
    add_vec : optional (N, 1, Cout) f32 broadcast add (time embedding)
    res     : optional (N, H*W, Cout) residual tensor added in the epilogue
    """
    N, H, W, Cin = x.shape
    KK, Cin2, Cout = p["w"].shape
    assert Cin == Cin2
    ksize = 1 if KK == 1 else 3
    Ho, Wo = H, W
    HoWo = Ho * Wo

    if ksize == 1:
        xin = x.reshape(N, HoWo, Cin)
        x_spec = pl.BlockSpec((1, HoWo, Cin), lambda b: (b, 0, 0))
    else:
        # TODO(synk): build the zero border inside the kernel (VMEM scratch)
        # to remove this padded-copy HBM round trip as well.
        xin = jnp.pad(x, ((0, 0), (1, 1), (1, 1), (0, 0)))
        Hp, Wp = H + 2, W + 2
        x_spec = pl.BlockSpec((1, Hp, Wp, Cin), lambda b: (b, 0, 0, 0))

    args = [xin]
    in_specs = [x_spec]
    if pre is not None:
        scale, shift = pre
        args += [scale, shift]
        in_specs += [pl.BlockSpec((1, 1, Cin), lambda b: (b, 0, 0))] * 2
    args += [p["w"], p["b"]]
    in_specs += [pl.BlockSpec(p["w"].shape, lambda b: (0, 0, 0)),
                 pl.BlockSpec((1, Cout), lambda b: (0, 0))]
    if add_vec is not None:
        args.append(add_vec)
        in_specs.append(pl.BlockSpec((1, 1, Cout), lambda b: (b, 0, 0)))
    if res is not None:
        args.append(res)
        in_specs.append(pl.BlockSpec((1, HoWo, Cout), lambda b: (b, 0, 0)))

    out = pl.pallas_call(
        partial(_conv_kernel, ksize=ksize, Ho=Ho, Wo=Wo,
                pre_norm=pre is not None, pre_silu=pre_silu,
                post_silu=post_silu, has_vec=add_vec is not None,
                has_res=res is not None),
        out_shape=jax.ShapeDtypeStruct((N, HoWo, Cout), out_dtype),
        grid=(N,),
        in_specs=in_specs,
        out_specs=pl.BlockSpec((1, HoWo, Cout), lambda b: (b, 0, 0)),
        compiler_params=_cparams(1),
    )(*args)
    return out.reshape(N, Ho, Wo, Cout)


# ----------------------------------------------------------------------------
# GroupNorm statistics kernel (apply is fused into the consuming conv)
# ----------------------------------------------------------------------------


def _gn_stats_kernel(x_ref, g_ref, b_ref, p_ref, pt_ref, scale_ref, shift_ref,
                     *, eps, inv_count):
    x = x_ref[0].astype(jnp.float32)                       # (HW, C)
    p = p_ref[...]                                         # (C, G) one-hot
    pt = pt_ref[...]                                       # (G, C)
    s1 = jnp.sum(x, axis=0, keepdims=True)                 # (1, C)
    mean_g = jnp.dot(s1, p, preferred_element_type=jnp.float32) * inv_count
    mean_c = jnp.dot(mean_g, pt, preferred_element_type=jnp.float32)  # (1, C)
    d = x - mean_c                                         # two-pass variance
    s2 = jnp.sum(d * d, axis=0, keepdims=True)
    var_g = jnp.dot(s2, p, preferred_element_type=jnp.float32) * inv_count
    inv_g = jax.lax.rsqrt(var_g + eps)
    inv_c = jnp.dot(inv_g, pt, preferred_element_type=jnp.float32)    # (1, C)
    scale = g_ref[...] * inv_c
    scale_ref[0] = scale
    shift_ref[0] = b_ref[...] - mean_c * scale


def gn_stats(x, gn_p, groups=32, eps=1e-5):
    """x: (N, H, W, C).  Returns (scale, shift), each (N, 1, C) f32, such that
    GroupNorm(x) == x * scale + shift.  The apply is fused into the next conv."""
    N, H, W, C = x.shape
    HW, G = H * W, groups
    cpg = C // G
    x2 = x.reshape(N, HW, C)
    gamma = gn_p["gamma"].reshape(1, C).astype(jnp.float32)
    beta = gn_p["beta"].reshape(1, C).astype(jnp.float32)
    P = (jnp.arange(C)[:, None] // cpg == jnp.arange(G)[None, :]).astype(jnp.float32)
    PT = jnp.transpose(P)
    # TODO(synk): tile the HW axis (grid reduction) for very large resolutions
    # so one slab never exceeds the v7x 64 MiB VMEM budget.
    scale, shift = pl.pallas_call(
        partial(_gn_stats_kernel, eps=eps, inv_count=1.0 / float(HW * cpg)),
        out_shape=(jax.ShapeDtypeStruct((N, 1, C), jnp.float32),
                   jax.ShapeDtypeStruct((N, 1, C), jnp.float32)),
        grid=(N,),
        in_specs=[
            pl.BlockSpec((1, HW, C), lambda b: (b, 0, 0)),
            pl.BlockSpec((1, C), lambda b: (0, 0)),
            pl.BlockSpec((1, C), lambda b: (0, 0)),
            pl.BlockSpec((C, G), lambda b: (0, 0)),
            pl.BlockSpec((G, C), lambda b: (0, 0)),
        ],
        out_specs=(pl.BlockSpec((1, 1, C), lambda b: (b, 0, 0)),
                   pl.BlockSpec((1, 1, C), lambda b: (b, 0, 0))),
        compiler_params=_cparams(1),
    )(x2, gamma, beta, P, PT)
    return scale, shift


# ----------------------------------------------------------------------------
# Fused attention kernel (per-sample; lane-dense (T, C) output)
# ----------------------------------------------------------------------------


def _attn_kernel(qkv_ref, o_ref, *, heads, dh, scale):
    x = qkv_ref[0]                                   # (T, 3C), layout [head][q|k|v][dh]
    outs = []
    for h in range(heads):
        base = h * 3 * dh
        q = x[:, base:base + dh]
        k = x[:, base + dh:base + 2 * dh]
        v = x[:, base + 2 * dh:base + 3 * dh]
        s = jax.lax.dot_general(q, k, (((1,), (1,)), ((), ())),
                                preferred_element_type=jnp.float32)   # (T, T)
        s = s * (scale * scale)
        s = s - jnp.max(s, axis=-1, keepdims=True)
        p = jnp.exp(s)
        p = p * pl.reciprocal(jnp.sum(p, axis=-1, keepdims=True), approx=True)
        outs.append(jnp.dot(p.astype(v.dtype), v, preferred_element_type=jnp.float32))
    o = jnp.concatenate(outs, axis=-1)               # (T, C), head-major = NHWC order
    o_ref[0] = o.astype(o_ref.dtype)


def attention(qkv, heads, dh):
    """qkv: (N, T, 3C) bf16 (PyTorch chunk order per head).  Output (N, T, C)
    is already the NHWC layout for the projection conv -> lane-dense store."""
    N, T, C3 = qkv.shape
    C = C3 // 3
    scale = 1.0 / math.sqrt(math.sqrt(dh))
    # TODO(synk): switch to flash-style online softmax over key tiles when T
    # grows past ~1024 (scores are T*T f32 per head in VMEM here).
    return pl.pallas_call(
        partial(_attn_kernel, heads=heads, dh=dh, scale=scale),
        out_shape=jax.ShapeDtypeStruct((N, T, C), qkv.dtype),
        grid=(N,),
        in_specs=[pl.BlockSpec((1, T, C3), lambda b: (b, 0, 0))],
        out_specs=pl.BlockSpec((1, T, C), lambda b: (b, 0, 0)),
        compiler_params=_cparams(1),
    )(qkv)


# ----------------------------------------------------------------------------
# Generic row-tiled matmul (time-embedding linears, stride-2 conv fallback)
# ----------------------------------------------------------------------------


def _matmul_kernel(a_ref, b_ref, bias_ref, o_ref, *, act, pre_act):
    a = a_ref[...]
    if pre_act == "silu":
        af = a.astype(jnp.float32)
        a = (af * jax.nn.sigmoid(af)).astype(a.dtype)
    r = jnp.dot(a, b_ref[...], preferred_element_type=jnp.float32)
    r = r + bias_ref[...]
    if act == "silu":
        r = r * jax.nn.sigmoid(r)
    o_ref[...] = r.astype(o_ref.dtype)


def matmul(a, w, bias, act="none", pre_act="none", out_dtype=jnp.bfloat16):
    M, K = a.shape
    K2, N = w.shape
    assert K == K2
    a = a.astype(jnp.bfloat16)
    tm = M if M < TM else TM
    return pl.pallas_call(
        partial(_matmul_kernel, act=act, pre_act=pre_act),
        out_shape=jax.ShapeDtypeStruct((M, N), out_dtype),
        grid=(pl.cdiv(M, tm),),
        in_specs=[pl.BlockSpec((tm, K), lambda i: (i, 0)),
                  pl.BlockSpec((K, N), lambda i: (0, 0)),
                  pl.BlockSpec((1, N), lambda i: (0, 0))],
        out_specs=pl.BlockSpec((tm, N), lambda i: (i, 0)),
        compiler_params=_cparams(1),
    )(a, w, bias)


def downsample_conv(x, p):
    """3x3 stride-2 conv.  TODO(synk): fold the stride-2 taps into the fused
    conv kernel (strided ref loads) instead of this small im2col fallback."""
    N, H, W, C = x.shape
    _, _, Cout = p["w"].shape
    xp = jnp.pad(x, ((0, 0), (1, 1), (1, 1), (0, 0)))
    Ho, Wo = (H - 1) // 2 + 1, (W - 1) // 2 + 1
    cols = [xp[:, dy:dy + 2 * Ho:2, dx:dx + 2 * Wo:2, :]
            for dy in range(3) for dx in range(3)]
    patches = jnp.stack(cols, axis=3)                 # (N, Ho, Wo, 9, C)
    A = patches.reshape(N * Ho * Wo, 9 * C)
    out = matmul(A, p["w"].reshape(9 * C, Cout), p["b"])
    return out.reshape(N, Ho, Wo, Cout)


# ----------------------------------------------------------------------------
# Parameter construction (deterministic; conv weights stored as (k*k, Cin, Cout))
# ----------------------------------------------------------------------------


def _dense_params(key, in_f, out_f):
    k1, k2 = jax.random.split(key)
    w = jax.random.normal(k1, (in_f, out_f), jnp.float32) / math.sqrt(in_f)
    b = 0.01 * jax.random.normal(k2, (out_f,), jnp.float32)
    return {"w": w.astype(jnp.bfloat16), "b": b.reshape(1, out_f)}


def _conv_params(key, in_c, out_c, k, bias=True):
    k1, k2 = jax.random.split(key)
    fan_in = in_c * k * k
    w = jax.random.normal(k1, (k * k, in_c, out_c), jnp.float32) / math.sqrt(fan_in)
    if bias:
        b = 0.01 * jax.random.normal(k2, (out_c,), jnp.float32)
    else:
        b = jnp.zeros((out_c,), jnp.float32)          # bias=False -> zero bias
    return {"w": w.astype(jnp.bfloat16), "b": b.reshape(1, out_c)}


def _gn_params(c):
    return {"gamma": jnp.ones((c,), jnp.float32), "beta": jnp.zeros((c,), jnp.float32)}


def _init_resblock(key, in_c, out_c, t_c):
    ks = jax.random.split(key, 4)
    p = {
        "norm1": _gn_params(in_c),
        "conv1": _conv_params(ks[0], in_c, out_c, 3),
        "time": _dense_params(ks[1], t_c, out_c),
        "norm2": _gn_params(out_c),
        "conv2": _conv_params(ks[2], out_c, out_c, 3),
    }
    if in_c != out_c:
        p["shortcut"] = _conv_params(ks[3], in_c, out_c, 1)
    return p


def _init_attn(key, c):
    ks = jax.random.split(key, 2)
    # qkv weight output-channel order matches PyTorch's chunk: [head][q|k|v][dh].
    return {
        "norm": _gn_params(c),
        "qkv": _conv_params(ks[0], c, 3 * c, 1, bias=False),
        "proj": _conv_params(ks[1], c, c, 1),
    }


def init_unet(key, in_channels, model_channels, out_channels, num_res_blocks,
              attention_resolutions, channel_mult, num_heads):
    keys = iter(jax.random.split(key, 256))
    time_embed_dim = model_channels * 4
    params = {
        "time1": _dense_params(next(keys), model_channels, time_embed_dim),
        "time2": _dense_params(next(keys), time_embed_dim, time_embed_dim),
    }

    down = [[("conv", _conv_params(next(keys), in_channels, model_channels, 3))]]
    down_block_chans = [model_channels]
    ch, ds = model_channels, 1
    for level, mult in enumerate(channel_mult):
        for _ in range(num_res_blocks):
            layers = [("res", _init_resblock(next(keys), ch, mult * model_channels,
                                             time_embed_dim))]
            ch = mult * model_channels
            if ds in attention_resolutions:
                layers.append(("attn", _init_attn(next(keys), ch)))
            down.append(layers)
            down_block_chans.append(ch)
        if level != len(channel_mult) - 1:
            down.append([("down", _conv_params(next(keys), ch, ch, 3))])
            down_block_chans.append(ch)
            ds *= 2
    params["down"] = down

    params["middle"] = [
        ("res", _init_resblock(next(keys), ch, ch, time_embed_dim)),
        ("attn", _init_attn(next(keys), ch)),
        ("res", _init_resblock(next(keys), ch, ch, time_embed_dim)),
    ]

    up = []
    for level, mult in list(enumerate(channel_mult))[::-1]:
        for i in range(num_res_blocks + 1):
            layers = [("res", _init_resblock(next(keys), ch + down_block_chans.pop(),
                                             model_channels * mult, time_embed_dim))]
            ch = model_channels * mult
            if ds in attention_resolutions:
                layers.append(("attn", _init_attn(next(keys), ch)))
            if level and i == num_res_blocks:
                layers.append(("up", _conv_params(next(keys), ch, ch, 3)))
                ds //= 2
            up.append(layers)
    params["up"] = up

    params["out_norm"] = _gn_params(ch)
    params["out_conv"] = _conv_params(next(keys), model_channels, out_channels, 3)
    return params


# ----------------------------------------------------------------------------
# Forward pass (activations are NHWC bf16 internally)
# ----------------------------------------------------------------------------


def timestep_embedding(timesteps, dim, max_period=10000):
    half = dim // 2
    freqs = jnp.exp(-math.log(max_period) * jnp.arange(half, dtype=jnp.float32) / half)
    args = timesteps[:, None].astype(jnp.float32) * freqs[None]
    emb = jnp.concatenate([jnp.cos(args), jnp.sin(args)], axis=-1)
    if dim % 2:
        emb = jnp.concatenate([emb, jnp.zeros_like(emb[:, :1])], axis=-1)
    return emb


def resblock_fwd(x, emb, p):
    N, H, W, _ = x.shape
    t = matmul(emb, p["time"]["w"], p["time"]["b"], pre_act="silu",
               out_dtype=jnp.float32)                          # SiLU(emb) @ W + b
    s1, sh1 = gn_stats(x, p["norm1"])
    h = conv2d(x, p["conv1"], pre=(s1, sh1), pre_silu=True,
               add_vec=t.reshape(N, 1, -1))                    # GN+SiLU+conv+temb fused
    s2, sh2 = gn_stats(h, p["norm2"])
    res = conv2d(x, p["shortcut"]) if "shortcut" in p else x
    # dropout p=0 -> identity
    return conv2d(h, p["conv2"], pre=(s2, sh2), pre_silu=True,
                  res=res.reshape(N, H * W, -1))               # residual add fused


def attnblock_fwd(x, p, num_heads):
    N, H, W, C = x.shape
    dh = C // num_heads
    s, sh = gn_stats(x, p["norm"])
    qkv = conv2d(x, p["qkv"], pre=(s, sh))                     # GN fused into 1x1 conv
    a = attention(qkv.reshape(N, H * W, 3 * C), num_heads, dh)
    return conv2d(a.reshape(N, H, W, C), p["proj"],
                  res=x.reshape(N, H * W, C))                  # proj + residual fused


def apply_layers(layers, h, emb, num_heads):
    for kind, p in layers:
        if kind == "conv":
            h = conv2d(h, p)
        elif kind == "res":
            h = resblock_fwd(h, emb, p)
        elif kind == "attn":
            h = attnblock_fwd(h, p, num_heads)
        elif kind == "down":
            h = downsample_conv(h, p)
        elif kind == "up":
            # TODO(synk): fold the x2 nearest-neighbor upsample into the conv's
            # read path (i//2 source-row mapping) to avoid the 4x HBM copy.
            h = jnp.repeat(jnp.repeat(h, 2, axis=1), 2, axis=2)
            h = conv2d(h, p)
    return h


def unet_forward(params, x, timesteps, cfg):
    # boundary: NCHW f32 -> NHWC bf16
    h = jnp.transpose(x, (0, 2, 3, 1)).astype(jnp.bfloat16)

    emb = timestep_embedding(timesteps, cfg["model_channels"])
    emb = matmul(emb, params["time1"]["w"], params["time1"]["b"], act="silu",
                 out_dtype=jnp.float32)
    emb = matmul(emb, params["time2"]["w"], params["time2"]["b"],
                 out_dtype=jnp.float32)

    hs = []
    for layers in params["down"]:
        h = apply_layers(layers, h, emb, cfg["num_heads"])
        hs.append(h)
    h = apply_layers(params["middle"], h, emb, cfg["num_heads"])
    for layers in params["up"]:
        # TODO(synk): fuse the skip concat into the first conv of the block
        # (two input refs + split weights) to drop this HBM concat pass.
        h = jnp.concatenate([h, hs.pop()], axis=-1)
        h = apply_layers(layers, h, emb, cfg["num_heads"])

    s, sh = gn_stats(h, params["out_norm"])
    h = conv2d(h, params["out_conv"], pre=(s, sh), pre_silu=True)
    # TODO(synk): transposed (W^T @ x) variant for Cout=3 so the final store is
    # lane-dense and lands directly in NCHW without this boundary transpose.
    return jnp.transpose(h, (0, 3, 1, 2)).astype(jnp.float32)


# ----------------------------------------------------------------------------

if __name__ == "__main__":
    key = jax.random.PRNGKey(0)
    kx, kt, kp = jax.random.split(key, 3)

    # Small-but-consistent config: GroupNorm(32, .) requires channels % 32 == 0.
    cfg = dict(in_channels=3, model_channels=32, out_channels=3, num_res_blocks=1,
               attention_resolutions=(2,), channel_mult=(1, 2), num_heads=4)

    B, H, W = 2, 16, 16
    params = init_unet(kp, **cfg)
    x = jax.random.normal(kx, (B, cfg["in_channels"], H, W), jnp.float32)
    timesteps = jax.random.randint(kt, (B,), 0, 1000)

    out = unet_forward(params, x, timesteps, cfg)
    out = jax.block_until_ready(out)
    assert out.shape == (B, cfg["out_channels"], H, W)
    assert bool(jnp.all(jnp.isfinite(out)))
    print("KERNEL_OK")
</pallas_src>

<mosaic_0001>
module attributes {stable_mosaic.version = 11 : i64} {
  func.func @_matmul_kernel(%arg0: i32, %arg1: memref<2x32xbf16, #tpu.memory_space<vmem>>, %arg2: memref<32x128xbf16, #tpu.memory_space<vmem>>, %arg3: memref<1x128xf32, #tpu.memory_space<vmem>>, %arg4: memref<2x128xf32, #tpu.memory_space<vmem>>) attributes {dimension_semantics = [#tpu.dimension_semantics<parallel>], iteration_bounds = array<i64: 1>, scalar_prefetch = 0 : i64, scratch_operands = 0 : i64, tpu.core_type = #tpu.core_type<tc>, window_params = [{transform_indices = @transform_0, window_bounds = array<i64: 2, 32>}, {pipeline_mode = #tpu.pipeline_mode<synchronous>, transform_indices = @transform_1, window_bounds = array<i64: 32, 128>}, {pipeline_mode = #tpu.pipeline_mode<synchronous>, transform_indices = @transform_2, window_bounds = array<i64: 1, 128>}, {transform_indices = @transform_3, window_bounds = array<i64: 2, 128>}]} {
    %c0 = arith.constant 0 : index
    %c0_0 = arith.constant 0 : index
    %0 = vector.load %arg1[%c0, %c0_0] : memref<2x32xbf16, #tpu.memory_space<vmem>>, vector<2x32xbf16>
    %c0_1 = arith.constant 0 : index
    %c0_2 = arith.constant 0 : index
    %1 = vector.load %arg2[%c0_1, %c0_2] : memref<32x128xbf16, #tpu.memory_space<vmem>>, vector<32x128xbf16>
    %cst = arith.constant dense<0.000000e+00> : vector<2x128xf32>
    %2 = tpu.matmul %0, %1, %cst {dimension_numbers = #tpu.dot_dimension_numbers<[1], [0], [0], [1], [0, 0, 1, 1], [], []>} : vector<2x32xbf16>, vector<32x128xbf16>, vector<2x128xf32> -> vector<2x128xf32>
    %c0_3 = arith.constant 0 : index
    %c0_4 = arith.constant 0 : index
    %3 = vector.load %arg3[%c0_3, %c0_4] : memref<1x128xf32, #tpu.memory_space<vmem>>, vector<1x128xf32>
    %4 = vector.broadcast %3 : vector<1x128xf32> to vector<2x128xf32>
    %5 = arith.addf %2, %4 : vector<2x128xf32>
    %6 = arith.negf %5 : vector<2x128xf32>
    %7 = math.exp %6 : vector<2x128xf32>
    %cst_5 = arith.constant 1.000000e+00 : f32
    %8 = vector.broadcast %cst_5 : f32 to vector<2x128xf32>
    %9 = arith.addf %8, %7 : vector<2x128xf32>
    %10 = arith.divf %8, %9 : vector<2x128xf32>
    %11 = arith.mulf %5, %10 : vector<2x128xf32>
    %c0_6 = arith.constant 0 : index
    %c0_7 = arith.constant 0 : index
    %12 = vector.load %arg4[%c0_6, %c0_7] : memref<2x128xf32, #tpu.memory_space<vmem>>, vector<2x128xf32>
    tpu.vector_store %arg4[%c0_6, %c0_7], %11 {strides = array<i32>} : memref<2x128xf32, #tpu.memory_space<vmem>>, vector<2x128xf32>,
    return
  }
  func.func @transform_0(%arg0: i32) -> (i32, i32) {
    %c0_i32 = arith.constant 0 : i32
    %c0_i32_0 = arith.constant 0 : i32
    return %arg0, %c0_i32 : i32, i32
  }
  func.func @transform_1(%arg0: i32) -> (i32, i32) {
    %c0_i32 = arith.constant 0 : i32
    %c0_i32_0 = arith.constant 0 : i32
    %c0_i32_1 = arith.constant 0 : i32
    return %c0_i32, %c0_i32_0 : i32, i32
  }
  func.func @transform_2(%arg0: i32) -> (i32, i32) {
    %c0_i32 = arith.constant 0 : i32
    %c0_i32_0 = arith.constant 0 : i32
    %c0_i32_1 = arith.constant 0 : i32
    return %c0_i32, %c0_i32_0 : i32, i32
  }
  func.func @transform_3(%arg0: i32) -> (i32, i32) {
    %c0_i32 = arith.constant 0 : i32
    %c0_i32_0 = arith.constant 0 : i32
    return %arg0, %c0_i32 : i32, i32
  }
}

</mosaic_0001>

<bundles_post_ra>
// kernel: tpu_custom_call.1
= control target key start
LH: loop header
LB: loop body
LE: loop exit
PB: predicated region body
PF: predicated region fallthrough
CT: control target
= control target key end

     0   :  { %8 = vsyncpa [#allocation3], 0  ;;  %s345_s0 = inlined_call_operand.hbm [shape: bf16[2,32], index: 0, kind: input, shape index: {}]   ;;  %s346_s1 = inlined_call_operand.hbm [shape: bf16[32,128], index: 1, kind: input, shape index: {}]   ;;  %s347_s2 = inlined_call_operand.hbm [shape: f32[1,128], index: 2, kind: input, shape index: {}]   ;;  %s348_s3 = inlined_call_operand.hbm [shape: f32[2,128], index: 3, kind: output, shape index: {}]  }
   0x1   :  { %9 = vsyncpa [#allocation6], 0 }
   0x2   :  { %10 = vsyncpa [#allocation4], 0  ;;  %s269_s12 = smov [#allocation5]   ;;  %s175_s16 = scalar_lea.hbm %s346_s1, 256 }
   0x3   :  { %s26_s13 = sshll.u32 %s269_s12, 4  ;;  %p176_p0 = scmp.ne.s32.totalorder %s346_s1, %s175_s16  ;;  %s27_s13 = int_to_ptr.vmem [resolvable:$true] %s26_s13 }
   0x4   :  { %p179_p1 = scmp.lt.u32.totalorder %s175_s16, %s346_s1 }
   0x6   :  { %p181_p2 = pnand %p179_p1, %p176_p0 }
   0x8   :  { %184 = shalt.err (!%p181_p2)
}
   0x9   :  { %s185_s21 = scalar_lea.vmem %s27_s13, 256  ;;  %p190_p4 = scmp.lt.s32.totalorder %s27_s13, %s27_s13 }
   0xa   :  { %p186_p3 = scmp.ne.s32.totalorder %s27_s13, %s185_s21  ;;  %p191_p5 = scmp.lt.s32.totalorder %s185_s21, %s185_s21 }
   0xc   :  { %p192_p6 = por %p191_p5, %p190_p4 }
   0xe   :  { %p193_p7 = pnand %p192_p6, %p186_p3 }
  0x10   :  { %196 = shalt.err (!%p193_p7)
}
  0x11   :  { %s270_s22 = smov 64   ;;  %s271_s23 = smov 4  }
  0x12   :  { %32 = dma.hbm_to_vmem [thread:$0]  %s346_s1, 256, %s27_s13, [#allocation6], %s270_s22, %s270_s22, %s271_s23  }
  0x13   :  { %s272_s26 = smov [#allocation2]   ;;  %s273_s28 = smov [#allocation7]  }
  0x14   :  { %s17_s27 = sshll.u32 %s272_s26, 4  ;;  %s39_s29 = sshll.u32 %s273_s28, 4  ;;  %s18_s27 = int_to_ptr.vmem [resolvable:$true] %s17_s27  ;;  %s40_s29 = int_to_ptr.vmem [resolvable:$true] %s39_s29 }
  0x15   :  { %s197_s5 = scalar_lea.hbm %s345_s0, 16 }
  0x16   :  { %p198_p8 = scmp.ne.s32.totalorder %s345_s0, %s197_s5  ;;  %p201_p9 = scmp.lt.u32.totalorder %s197_s5, %s345_s0 }
  0x18   :  { %p203_p10 = pnand %p201_p9, %p198_p8 }
  0x1a   :  { %206 = shalt.err (!%p203_p10)
}
  0x1b   :  { %s207_s1 = scalar_lea.vmem %s18_s27, 16  ;;  %s211_s10 = scalar_lea.vmem %s18_s27, 32 }
  0x1c   :  { %p208_p11 = scmp.ne.s32.totalorder %s18_s27, %s207_s1  ;;  %p212_p12 = scmp.lt.s32.totalorder %s18_s27, %s18_s27 }
  0x1d   :  { %p213_p13 = scmp.lt.s32.totalorder %s211_s10, %s207_s1 }
  0x1f   :  { %p214_p0 = por %p213_p13, %p212_p12 }
  0x21   :  { %p215_p1 = pnand %p214_p0, %p208_p11 }
  0x23   :  { %218 = shalt.err (!%p215_p1)
}
  0x24   :  { %20 = dma.hbm_to_vmem [thread:$0]  %s345_s0, 16, %s18_s27, [#allocation3]  }
  0x25   :  { %s219_s15 = scalar_lea.hbm %s347_s2, 16 }
  0x26   :  { %p220_p2 = scmp.ne.s32.totalorder %s347_s2, %s219_s15  ;;  %p223_p3 = scmp.lt.u32.totalorder %s219_s15, %s347_s2 }
  0x28   :  { %p225_p4 = pnand %p223_p3, %p220_p2 }
  0x2a   :  { %228 = shalt.err (!%p225_p4)
}
  0x2b   :  { %s229_s20 = scalar_lea.vmem %s40_s29, 16  ;;  %s233_s21 = scalar_lea.vmem %s40_s29, 32 }
  0x2c   :  { %p230_p5 = scmp.ne.s32.totalorder %s40_s29, %s229_s20  ;;  %p234_p6 = scmp.lt.s32.totalorder %s40_s29, %s40_s29 }
  0x2d   :  { %p235_p7 = scmp.lt.s32.totalorder %s233_s21, %s229_s20 }
  0x2f   :  { %p236_p8 = por %p235_p7, %p234_p6 }
  0x31   :  { %p237_p9 = pnand %p236_p8, %p230_p5 }
  0x33   :  { %240 = shalt.err (!%p237_p9)
}
  0x34   :  { %42 = dma.hbm_to_vmem [thread:$0]  %s347_s2, 16, %s40_s29, [#allocation6]  }
  0x35   :  { %263 = dma.done.wait [#allocation3], 16  }
  0x36   :  { %264 = vsyncadd [#allocation3], 4294967280 }
  0x37   :  { %265 = dma.done.wait [#allocation6], 272  }
  0x38   :  { %266 = vsyncadd [#allocation6], 4294967024  ;;  %v274_v0 = vmov 0.0   ;;  %vm275_vm0 = vmmov 0   ;;  %v169_v1 = vld [vmem:[#allocation5] sm:$0xff]   ;;  %v170_v2 = vld [vmem:[#allocation5 + $0x8] sm:$0xff]  }
  0x39   :  { %153 = vmatprep.subr.bf16.mxu0 %v274_v0  ;;  %157 = vmatprep.mubr.msk.bf16.mxu0 %vm275_vm0, %v274_v0  ;;  %v53_v3 = vld [vmem:[#allocation2] sm:$0x1]  ;;  %vm77_vm1 = vcmask 261120   ;;  %v145_v4 = vld [vmem:[#allocation7] ss:$0 sm:$0xff]  ;;  %s276_s2 = smov [#allocation8]  }
  0x3a   :  { %154 = vmatpush3.bf16.msra.mxu0 %v169_v1  ;;  %s135_s23 = sshll.u32 %s276_s2, 4  ;;  %s136_s23 = int_to_ptr.vmem [resolvable:$true] %s135_s23 }
  0x3b   :  { %155 = vmatprep.subr.bf16.mxu0 %v274_v0  ;;  %s241_s24 = scalar_lea.vmem %s136_s23, 32  ;;  %p246_p11 = scmp.lt.s32.totalorder %s136_s23, %s136_s23 }
  0x3c   :  { %p242_p10 = scmp.ne.s32.totalorder %s136_s23, %s241_s24  ;;  %p247_p12 = scmp.lt.s32.totalorder %s241_s24, %s241_s24 }
  0x3e   :  { %156 = vmatpush3.bf16.msra.mxu0 %v170_v2  ;;  %p248_p13 = por %p247_p12, %p246_p11 }
  0x40   :  { %p249_p0 = pnand %p248_p13, %p242_p10 }
  0x41   :  { %158 = vmatmul.mubr.msk.bf16.vlgmr.msra.gmra.mrb[0].mxu0 %vm77_vm1, %v53_v3 }
 0x114   :  { %v115_v5 = vpop.f32.mrb[0].mxu0 }
 0x115   :  { %v116_v6 = vadd.f32 %v145_v4, %v115_v5  ;;  %v159_v7 = vpop.f32.mrb[1].mxu0 }
 0x116   :  { %v118_v8 = vpop.f32.mrb[2].mxu0 }
 0x117   :  { %v149_v9 = vmul.f32 -1.442695, %v116_v6  ;;  %v160_v10 = vpop.f32.mrb[3].mxu0 }
 0x119   :  { %171 = vpow2.f32 %v149_v9 }
 0x123   :  { %v172_v11 = vpop.eup %171 }
 0x124   :  { %v124_v12 = vadd.f32 1.0, %v172_v11 }
 0x126   :  { %173 = vrcp.f32 %v124_v12 }
 0x130   :  { %v174_v13 = vpop.eup %173 }
 0x131   :  { %v127_v14 = vmul.f32 %v174_v13, %v116_v6 }
 0x133   :  { %128 = vst [vmem:[#allocation8] sm:$0x3] %v127_v14 }
 0x134   :  { %252 = shalt.err (!%p249_p0)
}
 0x135   :  { %s253_s27 = scalar_lea.hbm %s348_s3, 32 }
 0x136   :  { %p254_p1 = scmp.ne.s32.totalorder %s348_s3, %s253_s27  ;;  %p257_p2 = scmp.lt.u32.totalorder %s253_s27, %s348_s3 }
 0x138   :  { %p259_p3 = pnand %p257_p2, %p254_p1 }
 0x13a   :  { %262 = shalt.err (!%p259_p3)
}
 0x13b   :  { %138 = dma.vmem_to_hbm [thread:$0]  %s136_s23, 32, %s348_s3, [#allocation4]  }
 0x13c   :  { %267 = dma.done.wait [#allocation4], 32  }
 0x13d   :  { %268 = vsyncadd [#allocation4], 4294967264 }
 0x13e   :  { %142 = vsyncpa [#allocation3], 1 }
 0x13f   :  { %143 = vsyncpa [#allocation6], 1 }
 0x140   :  { %144 = vsyncpa [#allocation4], 1 }

</bundles_post_ra>
